<compile_context>
chip_gen: v7x
topology: tpu7x:2x2x1
jax: 0.10.0
libtpu: 0.0.40
codegen_flags: <defaults>
</compile_context>

<pallas_src>
import jax
import jax.numpy as jnp
from jax.experimental import pallas as pl
from jax.experimental.pallas import tpu as pltpu

FOLD = 8  # batch rows packed per lane-dense row (8 * state_dim lanes)


def _round_up(x, m):
    return ((x + m - 1) // m) * m


def actor_kernel(s_ref, w1_ref, b1_ref, w2_ref, b2_ref, bound_ref, out_ref):
    # s is streamed from HBM in its original dtype (f32); cast to the matmul
    # dtype here on the VPU -- hidden under the DMA, no extra HBM pass.
    s = s_ref[...].astype(w1_ref.dtype)
    # Layer 1 (block-diagonal packed): (tb, 8*S) @ (8*S, 8*Hp), f32 MXU acc.
    h = jnp.dot(s, w1_ref[...], preferred_element_type=jnp.float32)
    h = jnp.maximum(h + b1_ref[...], 0.0)
    # Layer 2 (block-diagonal packed): (tb, 8*Hp) @ (8*Hp, 8*A), f32 MXU acc.
    z = jnp.dot(h.astype(w2_ref.dtype), w2_ref[...],
                preferred_element_type=jnp.float32)
    z = z + b2_ref[...]
    # Exact sigmoid: EUP has plenty of slack, accuracy is free.
    a = jax.nn.sigmoid(z)
    out_ref[...] = (a * bound_ref[...]).astype(out_ref.dtype)


def actor_forward(s, w1, b1, w2, b2, action_bound, *, block_rows=8192,
                  compute_dtype=jnp.bfloat16, out_dtype=jnp.float32):
    """Fused Actor forward.

    s:            (B, state_dim)         float32 (cast to bf16 inside kernel)
    w1:           (state_dim, hidden)    float32
    b1:           (1, hidden)            float32
    w2:           (hidden, action_dim)   float32
    b2:           (1, action_dim)        float32
    action_bound: (1, action_dim)        float32
    returns:      (B, action_dim)        out_dtype (default float32)
    """
    B, S = s.shape
    H = w1.shape[1]
    A = w2.shape[1]

    # ---- One-time weight prep (tiny; hoist outside the hot path in real use).
    Hp = _round_up(H, 8)                                       # 30 -> 32
    w1p = jnp.pad(w1.astype(jnp.float32), ((0, 0), (0, Hp - H)))
    b1p = jnp.pad(b1.astype(jnp.float32), ((0, 0), (0, Hp - H)))  # zero pad so
    w2p = jnp.pad(w2.astype(jnp.float32), ((0, Hp - H), (0, 0)))  # relu(pad)=0
    eye = jnp.eye(FOLD, dtype=jnp.float32)
    W1 = jnp.kron(eye, w1p).astype(compute_dtype)               # (8*S, 8*Hp)
    W2 = jnp.kron(eye, w2p).astype(compute_dtype)               # (8*Hp, 8*A)
    B1 = jnp.tile(b1p, (1, FOLD))                               # (1, 8*Hp) f32
    B2 = jnp.tile(b2.astype(jnp.float32), (1, FOLD))            # (1, 8*A)  f32
    BND = jnp.tile(action_bound.astype(jnp.float32), (1, FOLD))  # (1, 8*A)

    # ---- Batch: pad only to a multiple of FOLD(=8), then lane-pack (free). --
    Bp = _round_up(max(B, FOLD), FOLD)
    if Bp != B:
        s = jnp.pad(s, ((0, Bp - B), (0, 0)))
    s_packed = s.reshape(Bp // FOLD, FOLD * S)   # pure row-major reshape
    Rp = Bp // FOLD

    # ---- Batch tile (in packed rows): big to amortize per-step overhead; ----
    # ---- keep >=2 grid steps for large batches so both v7x TCs get work. ----
    target = max(block_rows // FOLD, 8)
    if Rp >= 16:
        target = min(target, max(8, _round_up(Rp, 2) // 2))
    if Rp <= target:
        tb = Rp                      # single full-extent block (always legal)
    else:
        tb = max(8, (target // 8) * 8)
    grid = (pl.cdiv(Rp, tb),)        # partial final block handled by Pallas

    out_packed = pl.pallas_call(
        actor_kernel,
        out_shape=jax.ShapeDtypeStruct((Rp, FOLD * A), out_dtype),
        grid_spec=pltpu.PrefetchScalarGridSpec(
            num_scalar_prefetch=0,
            grid=grid,
            in_specs=[
                # Batch-tiled packed activations (pipelined / double-buffered).
                pl.BlockSpec((tb, FOLD * S), lambda i: (i, 0)),
                # Weights / biases / bound: constant index map -> VMEM-resident.
                pl.BlockSpec((FOLD * S, FOLD * Hp), lambda i: (0, 0)),
                pl.BlockSpec((1, FOLD * Hp), lambda i: (0, 0)),
                pl.BlockSpec((FOLD * Hp, FOLD * A), lambda i: (0, 0)),
                pl.BlockSpec((1, FOLD * A), lambda i: (0, 0)),
                pl.BlockSpec((1, FOLD * A), lambda i: (0, 0)),
            ],
            out_specs=pl.BlockSpec((tb, FOLD * A), lambda i: (i, 0)),
        ),
        compiler_params=pltpu.CompilerParams(
            dimension_semantics=("parallel",),
            vmem_limit_bytes=32 * 1024 * 1024,
        ),
    )(s_packed, W1, B1, W2, B2, BND)

    # Free reshape back to (Bp, A); slice off the (<=7) padded batch rows.
    return out_packed.reshape(Bp, A)[:B]


def init_actor_params(key, state_dim, action_dim, hidden=30):
    """Init mirroring the PyTorch module: weights ~ N(0, 0.3), biases = 0.1.
    Weights stored as (in, out) (transposed vs. torch Linear)."""
    k1, k2 = jax.random.split(key)
    w1 = 0.3 * jax.random.normal(k1, (state_dim, hidden), dtype=jnp.float32)
    b1 = jnp.full((1, hidden), 0.1, dtype=jnp.float32)
    w2 = 0.3 * jax.random.normal(k2, (hidden, action_dim), dtype=jnp.float32)
    b2 = jnp.full((1, action_dim), 0.1, dtype=jnp.float32)
    return w1, b1, w2, b2


if __name__ == "__main__":
    # Small shapes consistent with the module.
    batch, state_dim, action_dim = 2, 16, 4

    key = jax.random.PRNGKey(0)
    k_s, k_p = jax.random.split(key)

    s = jax.random.normal(k_s, (batch, state_dim), dtype=jnp.float32)
    w1, b1, w2, b2 = init_actor_params(k_p, state_dim, action_dim)
    action_bound = jnp.array([[2.0, 1.0, 0.5, 3.0]], dtype=jnp.float32)  # (1, A)

    out = actor_forward(s, w1, b1, w2, b2, action_bound)
    out = jax.block_until_ready(out)

    # Plain-JAX f32 reference (kernel uses bf16 weights -> modest tolerance).
    h_ref = jnp.maximum(s @ w1 + b1, 0.0)
    ref = jax.nn.sigmoid(h_ref @ w2 + b2) * action_bound
    assert out.shape == (batch, action_dim)
    assert jnp.allclose(out, ref, atol=2e-2, rtol=2e-2), (out, ref)

    print("KERNEL_OK")
</pallas_src>

<mosaic_0001>
module attributes {stable_mosaic.version = 11 : i64} {
  func.func @actor_kernel(%arg0: i32, %arg1: memref<1x128xf32, #tpu.memory_space<vmem>>, %arg2: memref<128x256xbf16, #tpu.memory_space<vmem>>, %arg3: memref<1x256xf32, #tpu.memory_space<vmem>>, %arg4: memref<256x32xbf16, #tpu.memory_space<vmem>>, %arg5: memref<1x32xf32, #tpu.memory_space<vmem>>, %arg6: memref<1x32xf32, #tpu.memory_space<vmem>>, %arg7: memref<1x32xf32, #tpu.memory_space<vmem>>) attributes {dimension_semantics = [#tpu.dimension_semantics<parallel>], iteration_bounds = array<i64: 1>, scalar_prefetch = 0 : i64, scratch_operands = 0 : i64, tpu.core_type = #tpu.core_type<tc>, window_params = [{transform_indices = @transform_0, window_bounds = array<i64: 1, 128>}, {pipeline_mode = #tpu.pipeline_mode<synchronous>, transform_indices = @transform_1, window_bounds = array<i64: 128, 256>}, {pipeline_mode = #tpu.pipeline_mode<synchronous>, transform_indices = @transform_2, window_bounds = array<i64: 1, 256>}, {pipeline_mode = #tpu.pipeline_mode<synchronous>, transform_indices = @transform_3, window_bounds = array<i64: 256, 32>}, {pipeline_mode = #tpu.pipeline_mode<synchronous>, transform_indices = @transform_4, window_bounds = array<i64: 1, 32>}, {pipeline_mode = #tpu.pipeline_mode<synchronous>, transform_indices = @transform_5, window_bounds = array<i64: 1, 32>}, {transform_indices = @transform_6, window_bounds = array<i64: 1, 32>}]} {
    %c0 = arith.constant 0 : index
    %c0_0 = arith.constant 0 : index
    %0 = vector.load %arg1[%c0, %c0_0] : memref<1x128xf32, #tpu.memory_space<vmem>>, vector<1x128xf32>
    %1 = arith.truncf %0 : vector<1x128xf32> to vector<1x128xbf16>
    %c0_1 = arith.constant 0 : index
    %c0_2 = arith.constant 0 : index
    %2 = vector.load %arg2[%c0_1, %c0_2] : memref<128x256xbf16, #tpu.memory_space<vmem>>, vector<128x256xbf16>
    %cst = arith.constant dense<0.000000e+00> : vector<1x256xf32>
    %3 = tpu.matmul %1, %2, %cst {dimension_numbers = #tpu.dot_dimension_numbers<[1], [0], [0], [1], [0, 0, 1, 1], [], []>} : vector<1x128xbf16>, vector<128x256xbf16>, vector<1x256xf32> -> vector<1x256xf32>
    %c0_3 = arith.constant 0 : index
    %c0_4 = arith.constant 0 : index
    %4 = vector.load %arg3[%c0_3, %c0_4] : memref<1x256xf32, #tpu.memory_space<vmem>>, vector<1x256xf32>
    %5 = arith.addf %3, %4 : vector<1x256xf32>
    %cst_5 = arith.constant 0.000000e+00 : f32
    %6 = vector.broadcast %cst_5 : f32 to vector<1x256xf32>
    %7 = arith.maximumf %5, %6 : vector<1x256xf32>
    %8 = arith.truncf %7 : vector<1x256xf32> to vector<1x256xbf16>
    %c0_6 = arith.constant 0 : index
    %c0_7 = arith.constant 0 : index
    %9 = vector.load %arg4[%c0_6, %c0_7] : memref<256x32xbf16, #tpu.memory_space<vmem>>, vector<256x32xbf16>
    %cst_8 = arith.constant dense<0.000000e+00> : vector<1x32xf32>
    %10 = tpu.matmul %8, %9, %cst_8 {dimension_numbers = #tpu.dot_dimension_numbers<[1], [0], [0], [1], [0, 0, 1, 1], [], []>} : vector<1x256xbf16>, vector<256x32xbf16>, vector<1x32xf32> -> vector<1x32xf32>
    %c0_9 = arith.constant 0 : index
    %c0_10 = arith.constant 0 : index
    %11 = vector.load %arg5[%c0_9, %c0_10] : memref<1x32xf32, #tpu.memory_space<vmem>>, vector<1x32xf32>
    %12 = arith.addf %10, %11 : vector<1x32xf32>
    %13 = arith.negf %12 : vector<1x32xf32>
    %14 = math.exp %13 : vector<1x32xf32>
    %cst_11 = arith.constant 1.000000e+00 : f32
    %15 = vector.broadcast %cst_11 : f32 to vector<1x32xf32>
    %16 = arith.addf %15, %14 : vector<1x32xf32>
    %17 = arith.divf %15, %16 : vector<1x32xf32>
    %c0_12 = arith.constant 0 : index
    %c0_13 = arith.constant 0 : index
    %18 = vector.load %arg6[%c0_12, %c0_13] : memref<1x32xf32, #tpu.memory_space<vmem>>, vector<1x32xf32>
    %19 = arith.mulf %17, %18 : vector<1x32xf32>
    %c0_14 = arith.constant 0 : index
    %c0_15 = arith.constant 0 : index
    %20 = vector.load %arg7[%c0_14, %c0_15] : memref<1x32xf32, #tpu.memory_space<vmem>>, vector<1x32xf32>
    tpu.vector_store %arg7[%c0_14, %c0_15], %19 {strides = array<i32>} : memref<1x32xf32, #tpu.memory_space<vmem>>, vector<1x32xf32>,
    return
  }
  func.func @transform_0(%arg0: i32) -> (i32, i32) {
    %c0_i32 = arith.constant 0 : i32
    %c0_i32_0 = arith.constant 0 : i32
    return %arg0, %c0_i32 : i32, i32
  }
  func.func @transform_1(%arg0: i32) -> (i32, i32) {
    %c0_i32 = arith.constant 0 : i32
    %c0_i32_0 = arith.constant 0 : i32
    %c0_i32_1 = arith.constant 0 : i32
    return %c0_i32, %c0_i32_0 : i32, i32
  }
  func.func @transform_2(%arg0: i32) -> (i32, i32) {
    %c0_i32 = arith.constant 0 : i32
    %c0_i32_0 = arith.constant 0 : i32
    %c0_i32_1 = arith.constant 0 : i32
    return %c0_i32, %c0_i32_0 : i32, i32
  }
  func.func @transform_3(%arg0: i32) -> (i32, i32) {
    %c0_i32 = arith.constant 0 : i32
    %c0_i32_0 = arith.constant 0 : i32
    %c0_i32_1 = arith.constant 0 : i32
    return %c0_i32, %c0_i32_0 : i32, i32
  }
  func.func @transform_4(%arg0: i32) -> (i32, i32) {
    %c0_i32 = arith.constant 0 : i32
    %c0_i32_0 = arith.constant 0 : i32
    %c0_i32_1 = arith.constant 0 : i32
    return %c0_i32, %c0_i32_0 : i32, i32
  }
  func.func @transform_5(%arg0: i32) -> (i32, i32) {
    %c0_i32 = arith.constant 0 : i32
    %c0_i32_0 = arith.constant 0 : i32
    %c0_i32_1 = arith.constant 0 : i32
    return %c0_i32, %c0_i32_0 : i32, i32
  }
  func.func @transform_6(%arg0: i32) -> (i32, i32) {
    %c0_i32 = arith.constant 0 : i32
    %c0_i32_0 = arith.constant 0 : i32
    return %arg0, %c0_i32 : i32, i32
  }
}

</mosaic_0001>

<bundles_post_ra>
// kernel: tpu_custom_call.1
= control target key start
LH: loop header
LB: loop body
LE: loop exit
PB: predicated region body
PF: predicated region fallthrough
CT: control target
= control target key end

     0   :  { %v498_v2 = vmov 0   ;;  %s655_s0 = inlined_call_operand.vmem [shape: f32[1,128], index: 0, kind: input, shape index: {}]   ;;  %s656_s1 = inlined_call_operand.vmem [shape: bf16[128,256], index: 1, kind: input, shape index: {}]   ;;  %s657_s2 = inlined_call_operand.vmem [shape: f32[1,256], index: 2, kind: input, shape index: {}]   ;;  %s658_s3 = inlined_call_operand.vmem [shape: bf16[256,32], index: 3, kind: input, shape index: {}]   ;;  %s659_s4 = inlined_call_operand.vmem [shape: f32[1,32], index: 4, kind: input, shape index: {}]   ;;  %s660_s5 = inlined_call_operand.vmem [shape: f32[1,32], index: 5, kind: input, shape index: {}]   ;;  %s661_s6 = inlined_call_operand.hbm [shape: f32[1,32], index: 6, kind: output, shape index: {}]  }
   0x1   :  { %v430_v0 = vld [vmem:[%s656_s1 + $0x4] ss:$8 sps:$4 sm:$0xff]   ;;  %v432_v1 = vld [vmem:[%s656_s1] ss:$8 sps:$4 sm:$0xff]   ;;  %167 = vmatprep.mubr.bf16.mxu0 %v498_v2  ;;  %v433_v3 = vld [vmem:[%s656_s1 + $0x14] ss:$8 sps:$4 sm:$0xff]  }
   0x2   :  { %135 = vmatprep.subr.bf16.mxu0 %v430_v0  ;;  %v435_v4 = vld [vmem:[%s656_s1 + $0x10] ss:$8 sps:$4 sm:$0xff]   ;;  %v436_v5 = vld [vmem:[%s656_s1 + $0x24] ss:$8 sps:$4 sm:$0xff]   ;;  %v438_v6 = vld [vmem:[%s656_s1 + $0x20] ss:$8 sps:$4 sm:$0xff]  }
   0x3   :  { %136 = vmatpush1.bf16.msra.mxu0 %v432_v1  ;;  %v439_v7 = vld [vmem:[%s656_s1 + $0x34] ss:$8 sps:$4 sm:$0xff]   ;;  %v441_v8 = vld [vmem:[%s656_s1 + $0x30] ss:$8 sps:$4 sm:$0xff]   ;;  %v442_v9 = vld [vmem:[%s656_s1 + $0x44] ss:$8 sps:$4 sm:$0xff]  }
   0x4   :  { %137 = vmatprep.subr.bf16.mxu0 %v433_v3  ;;  %v454_v10 = vld [vmem:[%s658_s3 + $0x40] sm:$0xff]   ;;  %v456_v13 = vld [vmem:[%s658_s3 + $0x48] sm:$0xff]   ;;  %v458_v15 = vld [vmem:[%s658_s3 + $0x50] sm:$0xff]  }
   0x5   :  { %v455_v11 = vld [vmem:[%s658_s3] sm:$0xff]   ;;  %406 = vmatprep.subr.bf16.mxu1 %v454_v10  ;;  %v457_v14 = vld [vmem:[%s658_s3 + $0x8] sm:$0xff]   ;;  %v445_v16 = vld [vmem:[%s656_s1 + $0x54] ss:$8 sps:$4 sm:$0xff]  }
   0x6   :  { %v444_v12 = vld [vmem:[%s656_s1 + $0x40] ss:$8 sps:$4 sm:$0xff]   ;;  %407 = vmatpush3.bf16.msra.mxu1 %v455_v11  ;;  %v447_v17 = vld [vmem:[%s656_s1 + $0x50] ss:$8 sps:$4 sm:$0xff]   ;;  %v448_v20 = vld [vmem:[%s656_s1 + $0x64] ss:$8 sps:$4 sm:$0xff]  }
   0x7   :  { %138 = vmatpush1.bf16.msra.mxu0 %v435_v4  ;;  %408 = vmatprep.subr.bf16.mxu1 %v456_v13  ;;  %v459_v18 = vld [vmem:[%s658_s3 + $0x10] sm:$0xff]   ;;  %v460_v19 = vld [vmem:[%s658_s3 + $0x58] sm:$0xff]   ;;  %v450_v21 = vld [vmem:[%s656_s1 + $0x60] ss:$8 sps:$4 sm:$0xff]  }
   0x8   :  { %139 = vmatprep.subr.bf16.mxu0 %v436_v5  ;;  %v451_v22 = vld [vmem:[%s656_s1 + $0x74] ss:$8 sps:$4 sm:$0xff]   ;;  %v462_v24 = vld [vmem:[%s658_s3 + $0x60] sm:$0xff]  }
   0x9   :  { %v461_v23 = vld [vmem:[%s658_s3 + $0x18] sm:$0xff]   ;;  %v463_v25 = vld [vmem:[%s658_s3 + $0x20] sm:$0xff]  }
   0xa   :  { %409 = vmatpush3.bf16.msra.mxu1 %v457_v14 }
   0xb   :  { %140 = vmatpush1.bf16.msra.mxu0 %v438_v6  ;;  %410 = vmatprep.subr.bf16.mxu1 %v458_v15 }
   0xc   :  { %141 = vmatprep.subr.bf16.mxu0 %v439_v7 }
   0xe   :  { %411 = vmatpush3.bf16.msra.mxu1 %v459_v18 }
   0xf   :  { %142 = vmatpush1.bf16.msra.mxu0 %v441_v8  ;;  %412 = vmatprep.subr.bf16.mxu1 %v460_v19 }
  0x10   :  { %143 = vmatprep.subr.bf16.mxu0 %v442_v9 }
  0x12   :  { %413 = vmatpush3.bf16.msra.mxu1 %v461_v23 }
  0x13   :  { %144 = vmatpush1.bf16.msra.mxu0 %v444_v12 }
  0x14   :  { %145 = vmatprep.subr.bf16.mxu0 %v445_v16 }
  0x17   :  { %146 = vmatpush1.bf16.msra.mxu0 %v447_v17 }
  0x18   :  { %147 = vmatprep.subr.bf16.mxu0 %v448_v20 }
  0x19   :  { %11 = vsyncpa [#allocation3], 0  ;;  %v453_v26 = vld [vmem:[%s656_s1 + $0x70] ss:$8 sps:$4 sm:$0xff]   ;;  %v25_v27 = vld [vmem:[%s655_s0] sm:$0x1]  ;;  %414 = vmatprep.subr.bf16.mxu1 %v462_v24  ;;  %v125_v35 = vlaneseq }
  0x1a   :  { %v464_v28 = vld [vmem:[%s658_s3 + $0x68] sm:$0xff]   ;;  %v26_v29 = vpack.c.bf16 %v25_v27, %v25_v27  ;;  %415 = vmatpush3.bf16.msra.mxu1 %v463_v25  ;;  %v466_v31 = vld [vmem:[%s658_s3 + $0x70] sm:$0xff]   ;;  %v468_v33 = vld [vmem:[%s658_s3 + $0x78] sm:$0xff]   ;;  %s499_s17 = smov [#allocation2]   ;;  %vm357_vm0 = vcmask 253952  }
  0x1b   :  { %148 = vmatpush1.bf16.msra.mxu0 %v450_v21  ;;  %v465_v30 = vld [vmem:[%s658_s3 + $0x28] sm:$0xff]   ;;  %416 = vmatprep.subr.bf16.mxu1 %v464_v28  ;;  %v467_v32 = vld [vmem:[%s658_s3 + $0x30] sm:$0xff]   ;;  %v469_v34 = vld [vmem:[%s658_s3 + $0x38] sm:$0xff]   ;;  %v126_v36 = vshrl.u32 %v125_v35, 7  ;;  %s365_s18 = sshll.u32 %s499_s17, 4  ;;  %s366_s18 = int_to_ptr.vmem [resolvable:$true] %s365_s18 }
  0x1c   :  { %149 = vmatprep.subr.bf16.mxu0 %v451_v22  ;;  %v43_v38 = vld [vmem:[%s657_s2] sm:$0x3]  ;;  %s478_s19 = scalar_lea.vmem %s366_s18, 32  ;;  %p479_p1 = scmp.lt.s32.totalorder %s366_s18, %s366_s18 }
  0x1d   :  { %v127_v37 = vsub.s32 0, %v126_v36  ;;  %v131_v39 = vsub.s32 1, %v126_v36  ;;  %v212_v53 = vld [vmem:[%s659_s4] sm:$0x1]  ;;  %s474_s4 = scalar_lea.vmem %s366_s18, 16 }
  0x1e   :  { %417 = vmatpush3.bf16.msra.mxu1 %v465_v30  ;;  %v355_v62 = vld [vmem:[%s660_s5] sm:$0x1]  ;;  %p475_p0 = scmp.ne.s32.totalorder %s366_s18, %s474_s4  ;;  %p480_p2 = scmp.lt.s32.totalorder %s478_s19, %s474_s4 }
  0x1f   :  { %150 = vmatpush1.bf16.msra.mxu0 %v453_v26  ;;  %418 = vmatprep.subr.bf16.mxu1 %v466_v31  ;;  %v128_v40 = vrot.slane %v43_v38, %v127_v37  ;;  %v132_v41 = vrot.slane %v43_v38, %v131_v39 }
  0x20   :  { %p481_p3 = por %p480_p2, %p479_p1 }
  0x22   :  { %168 = vmatmul.mubr.bf16.vlgmr.msra.gmra.mrb[0].mxu0 %v26_v29  ;;  %419 = vmatpush3.bf16.msra.mxu1 %v467_v32  ;;  %p482_p4 = pnand %p481_p3, %p475_p0 }
  0x23   :  { %420 = vmatprep.subr.bf16.mxu1 %v468_v33 }
  0x26   :  { %421 = vmatpush3.bf16.msra.mxu1 %v469_v34 }
  0xf5   :  { %v169_v42 = vpop.f32.mrb[0].mxu0 }
  0xf6   :  { %v170_v43 = vadd.f32 %v169_v42, %v128_v40  ;;  %v171_v44 = vpop.f32.mrb[1].mxu0 }
  0xf7   :  { %v172_v45 = vadd.f32 %v171_v44, %v132_v41  ;;  %v173_v46 = vpop.f32.mrb[2].mxu0 }
  0xf8   :  { %v176_v47 = vmax.f32 %v170_v43, 0.0  ;;  %v174_v48 = vpop.f32.mrb[3].mxu0 }
  0xf9   :  { %v177_v49 = vmax.f32 %v172_v45, 0.0 }
  0xfa   :  { %v178_v51 = vpack.c.bf16 %v176_v47, %v176_v47 }
  0xfb   :  { %v179_v50 = vpack.c.bf16 %v177_v49, %v177_v49 }
  0xfd   :  { %341 = vmatprep.mubr.bf16.mxu1 %v179_v50 }
  0xfe   :  { %342 = vmatmul.mubr.bf16.vlgmr.msra.gmra.mrb[0].mxu1 %v178_v51 }
 0x1d1   :  { %v422_v52 = vpop.f32.mrb[0].mxu1 }
 0x1d2   :  { %v423_v54 = vpop.f32.mrb[1].mxu1 }
 0x1d3   :  { %v424_v55 = vadd.f32 %v423_v54, %v422_v52  ;;  %v425_v56 = vpop.f32.mrb[2].mxu1 }
 0x1d4   :  { %v426_v57 = vpop.f32.mrb[3].mxu1 }
 0x1d5   :  { %v344_v58 = vadd.f32 %v424_v55, %v212_v53 }
 0x1d7   :  { %v405_v59 = vmul.f32 -1.442695, %v344_v58 }
 0x1d9   :  { %470 = vpow2.f32 %v405_v59 }
 0x1e3   :  { %v471_v60 = vpop.eup %470 }
 0x1e4   :  { %v352_v61 = vadd.f32 1.0, %v471_v60 }
 0x1e6   :  { %472 = vrcp.f32 %v352_v61 }
 0x1f0   :  { %v473_v63 = vpop.eup %472 }
 0x1f1   :  { %v356_v0 = vmul.f32 %v473_v63, %v355_v62 }
 0x1f3   :  { %358 = vst.msk [vmem:[#allocation2] sm:$0x1] %vm357_vm0, %v356_v0 }
 0x1f4   :  { %485 = shalt.err (!%p482_p4)
}
 0x1f5   :  { %s486_s22 = scalar_lea.hbm %s661_s6, 16 }
 0x1f6   :  { %p487_p5 = scmp.ne.s32.totalorder %s661_s6, %s486_s22  ;;  %p490_p6 = scmp.lt.u32.totalorder %s486_s22, %s661_s6 }
 0x1f8   :  { %p492_p7 = pnand %p490_p6, %p487_p5 }
 0x1fa   :  { %495 = shalt.err (!%p492_p7)
}
 0x1fb   :  { %368 = dma.vmem_to_hbm [thread:$0]  %s366_s18, 16, %s661_s6, [#allocation3]  }
 0x1fc   :  { %496 = dma.done.wait [#allocation3], 16  }
 0x1fd   :  { %497 = vsyncadd [#allocation3], 4294967280 }
 0x1fe   :  { %372 = vsyncpa [#allocation3], 1 }

</bundles_post_ra>
